<compile_context>
chip_gen: v5e
topology: v5e:2x2
jax: 0.10.0
libtpu: 0.0.40
codegen_flags: <defaults>
</compile_context>

<pallas_src>
import numpy as np
import jax
import jax.numpy as jnp
from jax.experimental import pallas as pl
from jax.experimental.pallas import tpu as pltpu


# --------------------------- host-side helpers -------------------------------

def _interp_matrix(in_size, out_size):
    """align_corners=True linear interpolation matrix (out_size, in_size)."""
    if in_size == 1:
        return np.ones((out_size, 1), np.float32)
    src = np.arange(out_size, dtype=np.float64) * (in_size - 1) / (out_size - 1)
    lo = np.clip(np.floor(src).astype(np.int64), 0, in_size - 2)
    frac = src - lo
    A = np.zeros((out_size, in_size), np.float64)
    A[np.arange(out_size), lo] += 1.0 - frac
    A[np.arange(out_size), lo + 1] += frac
    return A.astype(np.float32)


def _fold_bn(w_oihw, conv_b, gamma, beta, mean, var, eps=1e-5):
    """Fold Conv bias + BatchNorm (inference stats) into conv weight/bias (OIHW)."""
    inv = gamma / jnp.sqrt(var + eps)                    # (Cout,)
    w_eff = w_oihw * inv[:, None, None, None]
    b_eff = beta + (conv_b - mean) * inv
    return w_eff.astype(jnp.float32), b_eff.astype(jnp.float32)


# ------------------------------ fused kernel ---------------------------------

def up_fused(params, x1_nchw, x2_nchw):
    N, C1, H1, W1 = x1_nchw.shape
    N2, C2, H, W = x2_nchw.shape
    assert N == N2
    Cin1 = C2 + C1
    mid = params["w1"].shape[0]
    Cout = params["w2"].shape[0]

    Wp = W + 2                      # wide row stride (conv zero-pad width)
    HWp = H * Wp                    # "wide" flat length (one image, stride Wp)
    FLAT = (H + 3) * Wp             # padded image (H+2 rows) + spare row for tap overhang
    HEAD = Wp + 1                   # flat offset where the per-step data store begins
    TAIL = (H + 1) * Wp + 1         # first flat position past the per-step data store

    # --- bilinear 2x upsample (align_corners=True) + F.pad folded into one
    #     Kronecker operator; its output is already wide-flat + zero-padded.
    H2u, W2u = 2 * H1, 2 * W1
    dY, dX = H - H2u, W - W2u
    assert dY >= 0 and dX >= 0
    ah = np.zeros((H, H1), np.float32)
    ah[dY // 2: dY // 2 + H2u, :] = _interp_matrix(H1, H2u)
    aw = np.zeros((Wp, W1), np.float32)                  # wide-pad cols stay zero
    aw[dX // 2: dX // 2 + W2u, :] = _interp_matrix(W1, W2u)
    # U[i*W1 + k, y*Wp + x] = ah[y, i] * aw[x, k]
    u_mat = jnp.asarray(np.einsum("yi,xk->ikyx", ah, aw).reshape(H1 * W1, HWp))

    # lane-validity mask over the wide flat layout: 1.0 where col-in-row < W
    mask = jnp.asarray((np.arange(HWp) % Wp < W).astype(np.float32)[None, :])

    # matmul-form folded weights (columns ordered (ky, kx, cin)), bf16 for MXU
    w1m = jnp.transpose(params["w1"], (0, 2, 3, 1)).reshape(mid, 9 * Cin1)
    w2m = jnp.transpose(params["w2"], (0, 2, 3, 1)).reshape(Cout, 9 * mid)
    w1m = w1m.astype(jnp.bfloat16)
    w2m = w2m.astype(jnp.bfloat16)
    b1c = params["b1"].reshape(mid, 1)                   # f32
    b2c = params["b2"].reshape(Cout, 1)                  # f32

    # lane-dense inputs: x1 flat (last dim 64), x2 pre-placed in the wide
    # zero-padded flat layout (wrapper pad/reshape is layout plumbing only).
    x1f = x1_nchw.reshape(N, C1, H1 * W1)
    x2w = jnp.pad(x2_nchw, ((0, 0), (0, 0), (0, 0), (0, Wp - W)))
    x2w = x2w.reshape(N, C2, HWp).astype(jnp.bfloat16)

    def kernel(u_ref, mask_ref, w1_ref, b1_ref, w2_ref, b2_ref,
               x1_ref, x2_ref, o_ref, xpad1_ref, xpad2_ref):
        bf16 = xpad1_ref.dtype

        # Zero ONLY the small halo head/tail regions each step (the data
        # region [HEAD, HEAD+HWp) is fully rewritten every step and its wide
        # pad columns are zero by construction / masking).
        xpad1_ref[:, 0:HEAD] = jnp.zeros((Cin1, HEAD), bf16)
        xpad1_ref[:, TAIL:FLAT] = jnp.zeros((Cin1, FLAT - TAIL), bf16)
        xpad2_ref[:, 0:HEAD] = jnp.zeros((mid, HEAD), bf16)
        xpad2_ref[:, TAIL:FLAT] = jnp.zeros((mid, FLAT - TAIL), bf16)

        # ---- bilinear 2x upsample + F.pad: ONE matmul, already wide-flat ----
        x1u = jnp.dot(x1_ref[0], u_ref[...],
                      preferred_element_type=jnp.float32)          # (C1, HWp)

        # ---- conv1 input = cat([x2, up(x1)], channels), zero padded: two
        #      contiguous full-width stores; wide data dropped at offset Wp+1
        #      reproduces the 3x3 zero padding exactly. ----
        xpad1_ref[0:C2, HEAD:HEAD + HWp] = x2_ref[0].astype(bf16)
        xpad1_ref[C2:Cin1, HEAD:HEAD + HWp] = x1u.astype(bf16)

        msk = mask_ref[...]                                        # (1, HWp)

        def conv3x3(src_ref, w_ref, b_ref):
            # im2col: 9 lane-slices of the flat padded image -> one deep
            # bf16 matmul with f32 accumulation + folded BN bias + ReLU.
            # TODO(synk): for production Cin/H/W accumulate 9 dots (or tile
            # HWp/Cout/H) instead of materializing the 9x patches slab, chunk
            # K at 128 (v5e) / 256 (v6e, v7x) and set vmem_limit_bytes.
            xflat = src_ref[...]
            taps = [xflat[:, dy * Wp + dx: dy * Wp + dx + HWp]
                    for dy in range(3) for dx in range(3)]
            patches = jnp.concatenate(taps, axis=0)                # (9*Cin, HWp)
            acc = jnp.dot(w_ref[...], patches,
                          preferred_element_type=jnp.float32)      # (Cout, HWp)
            return jnp.maximum(acc + b_ref[...], 0.0)

        # conv1 -> zero garbage wide columns -> re-pad for conv2 (one store).
        h1 = conv3x3(xpad1_ref, w1_ref, b1_ref) * msk              # (mid, HWp)
        xpad2_ref[:, HEAD:HEAD + HWp] = h1.astype(bf16)

        out = conv3x3(xpad2_ref, w2_ref, b2_ref)                   # (Cout, HWp)
        o_ref[0] = out.astype(o_ref.dtype)                         # lane-dense store

    out_wide = pl.pallas_call(
        kernel,
        out_shape=jax.ShapeDtypeStruct((N, Cout, HWp), x1_nchw.dtype),
        grid_spec=pltpu.PrefetchScalarGridSpec(
            num_scalar_prefetch=0,
            grid=(N,),
            in_specs=[
                pl.BlockSpec((H1 * W1, HWp), lambda n: (0, 0)),       # upsample op
                pl.BlockSpec((1, HWp), lambda n: (0, 0)),             # lane mask
                pl.BlockSpec((mid, 9 * Cin1), lambda n: (0, 0)),      # w1 (bf16)
                pl.BlockSpec((mid, 1), lambda n: (0, 0)),             # b1
                pl.BlockSpec((Cout, 9 * mid), lambda n: (0, 0)),      # w2 (bf16)
                pl.BlockSpec((Cout, 1), lambda n: (0, 0)),            # b2
                pl.BlockSpec((1, C1, H1 * W1), lambda n: (n, 0, 0)),  # x1 (flat)
                pl.BlockSpec((1, C2, HWp), lambda n: (n, 0, 0)),      # x2 (wide)
            ],
            out_specs=pl.BlockSpec((1, Cout, HWp), lambda n: (n, 0, 0)),
            scratch_shapes=[pltpu.VMEM((Cin1, FLAT), jnp.bfloat16),
                            pltpu.VMEM((mid, FLAT), jnp.bfloat16)]),
        compiler_params=pltpu.CompilerParams(
            dimension_semantics=("parallel",)),
    )(u_mat, mask, w1m, b1c, w2m, b2c, x1f, x2w)

    # free metadata reshape + cheap slice of the garbage wide columns
    return out_wide.reshape(N, Cout, H, Wp)[:, :, :, :W]


def up_forward(params, x1_nchw, x2_nchw):
    return up_fused(params, x1_nchw, x2_nchw)


# ------------------------- parameters (deterministic) ------------------------

def make_up_params(key, in_channels, out_channels):
    # bilinear=True branch: DoubleConv(in_channels, out_channels, in_channels//2)
    mid = in_channels // 2
    ks = jax.random.split(key, 6)

    def bn_params(k, c):
        k1, k2, k3, k4 = jax.random.split(k, 4)
        gamma = 1.0 + 0.1 * jax.random.normal(k1, (c,), jnp.float32)
        beta = 0.1 * jax.random.normal(k2, (c,), jnp.float32)
        mean = 0.05 * jax.random.normal(k3, (c,), jnp.float32)
        var = jax.random.uniform(k4, (c,), jnp.float32, 0.5, 1.5)
        return gamma, beta, mean, var

    w1_oihw = 0.1 * jax.random.normal(ks[0], (mid, in_channels, 3, 3), jnp.float32)
    b1_conv = 0.1 * jax.random.normal(ks[1], (mid,), jnp.float32)
    w2_oihw = 0.1 * jax.random.normal(ks[2], (out_channels, mid, 3, 3), jnp.float32)
    b2_conv = 0.1 * jax.random.normal(ks[3], (out_channels,), jnp.float32)

    # TODO(synk): BatchNorm is applied with fixed (running) statistics, i.e.
    # inference-mode BN; training-time batch-statistics BN is not reproduced.
    g1, be1, m1, v1 = bn_params(ks[4], mid)
    g2, be2, m2, v2 = bn_params(ks[5], out_channels)

    w1, b1 = _fold_bn(w1_oihw, b1_conv, g1, be1, m1, v1)   # OIHW, folded
    w2, b2 = _fold_bn(w2_oihw, b2_conv, g2, be2, m2, v2)
    return {"w1": w1, "b1": b1, "w2": w2, "b2": b2}


# --------------------------- plain-JAX reference ------------------------------

def _reference(params, x1, x2):
    N, C1, H1, W1 = x1.shape
    ah = jnp.asarray(_interp_matrix(H1, 2 * H1))
    aw = jnp.asarray(_interp_matrix(W1, 2 * W1))
    x1u = jnp.einsum("ab,ncbw->ncaw", ah, x1)
    x1u = jnp.einsum("dw,ncaw->ncad", aw, x1u)
    diffY = x2.shape[2] - x1u.shape[2]
    diffX = x2.shape[3] - x1u.shape[3]
    x1u = jnp.pad(x1u, ((0, 0), (0, 0),
                        (diffY // 2, diffY - diffY // 2),
                        (diffX // 2, diffX - diffX // 2)))
    x = jnp.concatenate([x2, x1u], axis=1)

    def conv(inp, w_oihw, b):
        w_hwio = jnp.transpose(w_oihw, (2, 3, 1, 0))
        y = jax.lax.conv_general_dilated(
            inp, w_hwio, window_strides=(1, 1), padding="SAME",
            dimension_numbers=("NCHW", "HWIO", "NCHW"))
        return jnp.maximum(y + b[None, :, None, None], 0.0)

    h = conv(x, params["w1"], params["b1"])
    h = conv(h, params["w2"], params["b2"])
    return h


# ------------------------------------ main ------------------------------------

if __name__ == "__main__":
    key = jax.random.PRNGKey(0)
    k_p, k_x1, k_x2 = jax.random.split(key, 3)

    in_channels, out_channels = 8, 4          # Up(8, 4, bilinear=True)
    N = 2
    # x1 (deep features): (N, in_ch//2, 8, 8); x2 (skip): (N, in_ch//2, 16, 16)
    x1 = jax.random.normal(k_x1, (N, in_channels // 2, 8, 8), jnp.float32)
    x2 = jax.random.normal(k_x2, (N, in_channels // 2, 16, 16), jnp.float32)

    params = make_up_params(k_p, in_channels, out_channels)

    out = up_forward(params, x1, x2)
    out = jax.block_until_ready(out)

    ref = jax.block_until_ready(_reference(params, x1, x2))
    assert out.shape == (N, out_channels, 16, 16), out.shape
    assert np.all(np.isfinite(np.asarray(out)))
    # bf16 MXU inputs (weights/activations) with f32 accumulation vs f32 XLA
    # reference -> expect ~1e-2-level relative error.
    np.testing.assert_allclose(np.asarray(out), np.asarray(ref),
                               rtol=2e-2, atol=5e-2)
    print("KERNEL_OK")
</pallas_src>

<mosaic_0001>
module attributes {stable_mosaic.version = 11 : i64} {
  func.func @kernel(%arg0: i32, %arg1: memref<64x288xf32, #tpu.memory_space<vmem>>, %arg2: memref<1x288xf32, #tpu.memory_space<vmem>>, %arg3: memref<4x72xbf16, #tpu.memory_space<vmem>>, %arg4: memref<4x1xf32, #tpu.memory_space<vmem>>, %arg5: memref<4x36xbf16, #tpu.memory_space<vmem>>, %arg6: memref<4x1xf32, #tpu.memory_space<vmem>>, %arg7: memref<1x4x64xf32, #tpu.memory_space<vmem>>, %arg8: memref<1x4x288xbf16, #tpu.memory_space<vmem>>, %arg9: memref<1x4x288xf32, #tpu.memory_space<vmem>>, %arg10: memref<8x342xbf16, #tpu.memory_space<vmem>>, %arg11: memref<4x342xbf16, #tpu.memory_space<vmem>>) attributes {dimension_semantics = [#tpu.dimension_semantics<parallel>], iteration_bounds = array<i64: 2>, scalar_prefetch = 0 : i64, scratch_operands = 2 : i64, tpu.core_type = #tpu.core_type<tc>, window_params = [{pipeline_mode = #tpu.pipeline_mode<synchronous>, transform_indices = @transform_0, window_bounds = array<i64: 64, 288>}, {pipeline_mode = #tpu.pipeline_mode<synchronous>, transform_indices = @transform_1, window_bounds = array<i64: 1, 288>}, {pipeline_mode = #tpu.pipeline_mode<synchronous>, transform_indices = @transform_2, window_bounds = array<i64: 4, 72>}, {pipeline_mode = #tpu.pipeline_mode<synchronous>, transform_indices = @transform_3, window_bounds = array<i64: 4, 1>}, {pipeline_mode = #tpu.pipeline_mode<synchronous>, transform_indices = @transform_4, window_bounds = array<i64: 4, 36>}, {pipeline_mode = #tpu.pipeline_mode<synchronous>, transform_indices = @transform_5, window_bounds = array<i64: 4, 1>}, {transform_indices = @transform_6, window_bounds = array<i64: 1, 4, 64>}, {transform_indices = @transform_7, window_bounds = array<i64: 1, 4, 288>}, {transform_indices = @transform_8, window_bounds = array<i64: 1, 4, 288>}]} {
    %cst = arith.constant 0.000000e+00 : bf16
    %0 = vector.broadcast %cst : bf16 to vector<8x19xbf16>
    %c0 = arith.constant 0 : index
    %c0_0 = arith.constant 0 : index
    %1 = vector.load %arg10[%c0, %c0_0] : memref<8x342xbf16, #tpu.memory_space<vmem>>, vector<8x19xbf16>
    tpu.vector_store %arg10[%c0, %c0_0], %0 {strides = array<i32>} : memref<8x342xbf16, #tpu.memory_space<vmem>>, vector<8x19xbf16>,
    %cst_1 = arith.constant 0.000000e+00 : bf16
    %2 = vector.broadcast %cst_1 : bf16 to vector<8x35xbf16>
    %c0_2 = arith.constant 0 : index
    %c307 = arith.constant 307 : index
    %3 = vector.load %arg10[%c0_2, %c307] : memref<8x342xbf16, #tpu.memory_space<vmem>>, vector<8x35xbf16>
    tpu.vector_store %arg10[%c0_2, %c307], %2 {strides = array<i32>} : memref<8x342xbf16, #tpu.memory_space<vmem>>, vector<8x35xbf16>,
    %cst_3 = arith.constant 0.000000e+00 : bf16
    %4 = vector.broadcast %cst_3 : bf16 to vector<4x19xbf16>
    %c0_4 = arith.constant 0 : index
    %c0_5 = arith.constant 0 : index
    %5 = vector.load %arg11[%c0_4, %c0_5] : memref<4x342xbf16, #tpu.memory_space<vmem>>, vector<4x19xbf16>
    tpu.vector_store %arg11[%c0_4, %c0_5], %4 {strides = array<i32>} : memref<4x342xbf16, #tpu.memory_space<vmem>>, vector<4x19xbf16>,
    %cst_6 = arith.constant 0.000000e+00 : bf16
    %6 = vector.broadcast %cst_6 : bf16 to vector<4x35xbf16>
    %c0_7 = arith.constant 0 : index
    %c307_8 = arith.constant 307 : index
    %7 = vector.load %arg11[%c0_7, %c307_8] : memref<4x342xbf16, #tpu.memory_space<vmem>>, vector<4x35xbf16>
    tpu.vector_store %arg11[%c0_7, %c307_8], %6 {strides = array<i32>} : memref<4x342xbf16, #tpu.memory_space<vmem>>, vector<4x35xbf16>,
    %c0_9 = arith.constant 0 : index
    %c0_10 = arith.constant 0 : index
    %c0_11 = arith.constant 0 : index
    %8 = vector.load %arg7[%c0_9, %c0_10, %c0_11] : memref<1x4x64xf32, #tpu.memory_space<vmem>>, vector<1x4x64xf32>
    %9 = vector.shape_cast %8 : vector<1x4x64xf32> to vector<4x64xf32>
    %c0_12 = arith.constant 0 : index
    %c0_13 = arith.constant 0 : index
    %10 = vector.load %arg1[%c0_12, %c0_13] : memref<64x288xf32, #tpu.memory_space<vmem>>, vector<64x288xf32>
    %cst_14 = arith.constant dense<0.000000e+00> : vector<4x288xf32>
    %11 = tpu.matmul %9, %10, %cst_14 {dimension_numbers = #tpu.dot_dimension_numbers<[1], [0], [0], [1], [0, 0, 1, 1], [], []>} : vector<4x64xf32>, vector<64x288xf32>, vector<4x288xf32> -> vector<4x288xf32>
    %c0_15 = arith.constant 0 : index
    %c0_16 = arith.constant 0 : index
    %c0_17 = arith.constant 0 : index
    %12 = vector.load %arg8[%c0_15, %c0_16, %c0_17] : memref<1x4x288xbf16, #tpu.memory_space<vmem>>, vector<1x4x288xbf16>
    %13 = vector.shape_cast %12 : vector<1x4x288xbf16> to vector<4x288xbf16>
    %c0_18 = arith.constant 0 : index
    %c19 = arith.constant 19 : index
    %14 = vector.load %arg10[%c0_18, %c19] : memref<8x342xbf16, #tpu.memory_space<vmem>>, vector<4x288xbf16>
    tpu.vector_store %arg10[%c0_18, %c19], %13 {strides = array<i32>} : memref<8x342xbf16, #tpu.memory_space<vmem>>, vector<4x288xbf16>,
    %15 = arith.truncf %11 : vector<4x288xf32> to vector<4x288xbf16>
    %c4 = arith.constant 4 : index
    %c19_19 = arith.constant 19 : index
    %16 = vector.load %arg10[%c4, %c19_19] : memref<8x342xbf16, #tpu.memory_space<vmem>>, vector<4x288xbf16>
    tpu.vector_store %arg10[%c4, %c19_19], %15 {strides = array<i32>} : memref<8x342xbf16, #tpu.memory_space<vmem>>, vector<4x288xbf16>,
    %c0_20 = arith.constant 0 : index
    %c0_21 = arith.constant 0 : index
    %17 = vector.load %arg2[%c0_20, %c0_21] : memref<1x288xf32, #tpu.memory_space<vmem>>, vector<1x288xf32>
    %c0_22 = arith.constant 0 : index
    %c0_23 = arith.constant 0 : index
    %18 = vector.load %arg10[%c0_22, %c0_23] : memref<8x342xbf16, #tpu.memory_space<vmem>>, vector<8x342xbf16>
    %19 = vector.extract_strided_slice %18 {offsets = [0, 0], sizes = [8, 288], strides = [1, 1]} : vector<8x342xbf16> to vector<8x288xbf16>
    %20 = vector.extract_strided_slice %18 {offsets = [0, 1], sizes = [8, 288], strides = [1, 1]} : vector<8x342xbf16> to vector<8x288xbf16>
    %21 = vector.extract_strided_slice %18 {offsets = [0, 2], sizes = [8, 288], strides = [1, 1]} : vector<8x342xbf16> to vector<8x288xbf16>
    %22 = vector.extract_strided_slice %18 {offsets = [0, 18], sizes = [8, 288], strides = [1, 1]} : vector<8x342xbf16> to vector<8x288xbf16>
    %23 = vector.extract_strided_slice %18 {offsets = [0, 19], sizes = [8, 288], strides = [1, 1]} : vector<8x342xbf16> to vector<8x288xbf16>
    %24 = vector.extract_strided_slice %18 {offsets = [0, 20], sizes = [8, 288], strides = [1, 1]} : vector<8x342xbf16> to vector<8x288xbf16>
    %25 = vector.extract_strided_slice %18 {offsets = [0, 36], sizes = [8, 288], strides = [1, 1]} : vector<8x342xbf16> to vector<8x288xbf16>
    %26 = vector.extract_strided_slice %18 {offsets = [0, 37], sizes = [8, 288], strides = [1, 1]} : vector<8x342xbf16> to vector<8x288xbf16>
    %27 = vector.extract_strided_slice %18 {offsets = [0, 38], sizes = [8, 288], strides = [1, 1]} : vector<8x342xbf16> to vector<8x288xbf16>
    %28 = tpu.concatenate %19, %20, %21, %22, %23, %24, %25, %26, %27 in 0 : vector<8x288xbf16>, vector<8x288xbf16>, vector<8x288xbf16>, vector<8x288xbf16>, vector<8x288xbf16>, vector<8x288xbf16>, vector<8x288xbf16>, vector<8x288xbf16>, vector<8x288xbf16> -> vector<72x288xbf16>
    %c0_24 = arith.constant 0 : index
    %c0_25 = arith.constant 0 : index
    %29 = vector.load %arg3[%c0_24, %c0_25] : memref<4x72xbf16, #tpu.memory_space<vmem>>, vector<4x72xbf16>
    %cst_26 = arith.constant dense<0.000000e+00> : vector<4x288xf32>
    %30 = tpu.matmul %29, %28, %cst_26 {dimension_numbers = #tpu.dot_dimension_numbers<[1], [0], [0], [1], [0, 0, 1, 1], [], []>} : vector<4x72xbf16>, vector<72x288xbf16>, vector<4x288xf32> -> vector<4x288xf32>
    %c0_27 = arith.constant 0 : index
    %c0_28 = arith.constant 0 : index
    %31 = vector.load %arg4[%c0_27, %c0_28] : memref<4x1xf32, #tpu.memory_space<vmem>>, vector<4x1xf32>
    %32 = vector.broadcast %31 : vector<4x1xf32> to vector<4x288xf32>
    %33 = arith.addf %30, %32 : vector<4x288xf32>
    %cst_29 = arith.constant 0.000000e+00 : f32
    %34 = vector.broadcast %cst_29 : f32 to vector<4x288xf32>
    %35 = arith.maximumf %33, %34 : vector<4x288xf32>
    %36 = vector.broadcast %17 : vector<1x288xf32> to vector<4x288xf32>
    %37 = arith.mulf %35, %36 : vector<4x288xf32>
    %38 = arith.truncf %37 : vector<4x288xf32> to vector<4x288xbf16>
    %c0_30 = arith.constant 0 : index
    %c19_31 = arith.constant 19 : index
    %39 = vector.load %arg11[%c0_30, %c19_31] : memref<4x342xbf16, #tpu.memory_space<vmem>>, vector<4x288xbf16>
    tpu.vector_store %arg11[%c0_30, %c19_31], %38 {strides = array<i32>} : memref<4x342xbf16, #tpu.memory_space<vmem>>, vector<4x288xbf16>,
    %c0_32 = arith.constant 0 : index
    %c0_33 = arith.constant 0 : index
    %40 = vector.load %arg11[%c0_32, %c0_33] : memref<4x342xbf16, #tpu.memory_space<vmem>>, vector<4x342xbf16>
    %41 = vector.extract_strided_slice %40 {offsets = [0, 0], sizes = [4, 288], strides = [1, 1]} : vector<4x342xbf16> to vector<4x288xbf16>
    %42 = vector.extract_strided_slice %40 {offsets = [0, 1], sizes = [4, 288], strides = [1, 1]} : vector<4x342xbf16> to vector<4x288xbf16>
    %43 = vector.extract_strided_slice %40 {offsets = [0, 2], sizes = [4, 288], strides = [1, 1]} : vector<4x342xbf16> to vector<4x288xbf16>
    %44 = vector.extract_strided_slice %40 {offsets = [0, 18], sizes = [4, 288], strides = [1, 1]} : vector<4x342xbf16> to vector<4x288xbf16>
    %45 = vector.extract_strided_slice %40 {offsets = [0, 19], sizes = [4, 288], strides = [1, 1]} : vector<4x342xbf16> to vector<4x288xbf16>
    %46 = vector.extract_strided_slice %40 {offsets = [0, 20], sizes = [4, 288], strides = [1, 1]} : vector<4x342xbf16> to vector<4x288xbf16>
    %47 = vector.extract_strided_slice %40 {offsets = [0, 36], sizes = [4, 288], strides = [1, 1]} : vector<4x342xbf16> to vector<4x288xbf16>
    %48 = vector.extract_strided_slice %40 {offsets = [0, 37], sizes = [4, 288], strides = [1, 1]} : vector<4x342xbf16> to vector<4x288xbf16>
    %49 = vector.extract_strided_slice %40 {offsets = [0, 38], sizes = [4, 288], strides = [1, 1]} : vector<4x342xbf16> to vector<4x288xbf16>
    %50 = tpu.concatenate %41, %42, %43, %44, %45, %46, %47, %48, %49 in 0 : vector<4x288xbf16>, vector<4x288xbf16>, vector<4x288xbf16>, vector<4x288xbf16>, vector<4x288xbf16>, vector<4x288xbf16>, vector<4x288xbf16>, vector<4x288xbf16>, vector<4x288xbf16> -> vector<36x288xbf16>
    %c0_34 = arith.constant 0 : index
    %c0_35 = arith.constant 0 : index
    %51 = vector.load %arg5[%c0_34, %c0_35] : memref<4x36xbf16, #tpu.memory_space<vmem>>, vector<4x36xbf16>
    %cst_36 = arith.constant dense<0.000000e+00> : vector<4x288xf32>
    %52 = tpu.matmul %51, %50, %cst_36 {dimension_numbers = #tpu.dot_dimension_numbers<[1], [0], [0], [1], [0, 0, 1, 1], [], []>} : vector<4x36xbf16>, vector<36x288xbf16>, vector<4x288xf32> -> vector<4x288xf32>
    %c0_37 = arith.constant 0 : index
    %c0_38 = arith.constant 0 : index
    %53 = vector.load %arg6[%c0_37, %c0_38] : memref<4x1xf32, #tpu.memory_space<vmem>>, vector<4x1xf32>
    %54 = vector.broadcast %53 : vector<4x1xf32> to vector<4x288xf32>
    %55 = arith.addf %52, %54 : vector<4x288xf32>
    %cst_39 = arith.constant 0.000000e+00 : f32
    %56 = vector.broadcast %cst_39 : f32 to vector<4x288xf32>
    %57 = arith.maximumf %55, %56 : vector<4x288xf32>
    %c0_40 = arith.constant 0 : index
    %c0_41 = arith.constant 0 : index
    %c0_42 = arith.constant 0 : index
    %58 = vector.load %arg9[%c0_40, %c0_41, %c0_42] : memref<1x4x288xf32, #tpu.memory_space<vmem>>, vector<1x4x288xf32>
    %59 = vector.shape_cast %58 : vector<1x4x288xf32> to vector<4x288xf32>
    %60 = vector.shape_cast %57 : vector<4x288xf32> to vector<1x4x288xf32>
    tpu.vector_store %arg9[%c0_40, %c0_41, %c0_42], %60 {strides = array<i32>} : memref<1x4x288xf32, #tpu.memory_space<vmem>>, vector<1x4x288xf32>,
    return
  }
  func.func @transform_0(%arg0: i32) -> (i32, i32) {
    %c0_i32 = arith.constant 0 : i32
    %c0_i32_0 = arith.constant 0 : i32
    %c0_i32_1 = arith.constant 0 : i32
    return %c0_i32, %c0_i32_0 : i32, i32
  }
  func.func @transform_1(%arg0: i32) -> (i32, i32) {
    %c0_i32 = arith.constant 0 : i32
    %c0_i32_0 = arith.constant 0 : i32
    %c0_i32_1 = arith.constant 0 : i32
    return %c0_i32, %c0_i32_0 : i32, i32
  }
  func.func @transform_2(%arg0: i32) -> (i32, i32) {
    %c0_i32 = arith.constant 0 : i32
    %c0_i32_0 = arith.constant 0 : i32
    %c0_i32_1 = arith.constant 0 : i32
    return %c0_i32, %c0_i32_0 : i32, i32
  }
  func.func @transform_3(%arg0: i32) -> (i32, i32) {
    %c0_i32 = arith.constant 0 : i32
    %c0_i32_0 = arith.constant 0 : i32
    %c0_i32_1 = arith.constant 0 : i32
    return %c0_i32, %c0_i32_0 : i32, i32
  }
  func.func @transform_4(%arg0: i32) -> (i32, i32) {
    %c0_i32 = arith.constant 0 : i32
    %c0_i32_0 = arith.constant 0 : i32
    %c0_i32_1 = arith.constant 0 : i32
    return %c0_i32, %c0_i32_0 : i32, i32
  }
  func.func @transform_5(%arg0: i32) -> (i32, i32) {
    %c0_i32 = arith.constant 0 : i32
    %c0_i32_0 = arith.constant 0 : i32
    %c0_i32_1 = arith.constant 0 : i32
    return %c0_i32, %c0_i32_0 : i32, i32
  }
  func.func @transform_6(%arg0: i32) -> (i32, i32, i32) {
    %c0_i32 = arith.constant 0 : i32
    %c0_i32_0 = arith.constant 0 : i32
    %c0_i32_1 = arith.constant 0 : i32
    return %arg0, %c0_i32, %c0_i32_0 : i32, i32, i32
  }
  func.func @transform_7(%arg0: i32) -> (i32, i32, i32) {
    %c0_i32 = arith.constant 0 : i32
    %c0_i32_0 = arith.constant 0 : i32
    %c0_i32_1 = arith.constant 0 : i32
    return %arg0, %c0_i32, %c0_i32_0 : i32, i32, i32
  }
  func.func @transform_8(%arg0: i32) -> (i32, i32, i32) {
    %c0_i32 = arith.constant 0 : i32
    %c0_i32_0 = arith.constant 0 : i32
    %c0_i32_1 = arith.constant 0 : i32
    return %arg0, %c0_i32, %c0_i32_0 : i32, i32, i32
  }
}

</mosaic_0001>

<bundles_post_ra>
// kernel: tpu_custom_call.1
= control target key start
LH: loop header
LB: loop body
LE: loop exit
PB: predicated region body
PF: predicated region fallthrough
CT: control target
= control target key end

     0   :  { %s1882_s0 = inlined_call_operand.hbm [shape: f32[64,288], index: 0, kind: input, shape index: {}]   ;;  %s1883_s1 = inlined_call_operand.hbm [shape: f32[1,288], index: 1, kind: input, shape index: {}]   ;;  %s1884_s2 = inlined_call_operand.hbm [shape: bf16[4,72], index: 2, kind: input, shape index: {}]   ;;  %s1885_s3 = inlined_call_operand.vmem [shape: f32[4,1], index: 3, kind: input, shape index: {}]   ;;  %s1886_s4 = inlined_call_operand.vmem [shape: bf16[4,36], index: 4, kind: input, shape index: {}]   ;;  %s1887_s5 = inlined_call_operand.vmem [shape: f32[4,1], index: 5, kind: input, shape index: {}]   ;;  %s1888_s6 = inlined_call_operand.vmem [shape: f32[2,4,64], index: 6, kind: input, shape index: {}]   ;;  %s1889_s7 = inlined_call_operand.hbm [shape: bf16[2,4,288], index: 7, kind: input, shape index: {}]   ;;  %s1890_s8 = inlined_call_operand.hbm [shape: f32[2,4,288], index: 8, kind: output, shape index: {}]  }
   0x1   :  { %1892 = sst [smem:[#allocation18_spill]] %s1882_s0 }
   0x2   :  { %1893 = sst [smem:[#allocation19_spill]] %s1883_s1 }
   0x3   :  { %1894 = sst [smem:[#allocation20_spill]] %s1884_s2 }
   0x4   :  { %13 = vsyncpa [#allocation5], 0 }
   0x5   :  { %14 = vsyncpa [#allocation8], 0 }
   0x6   :  { %15 = vsyncpa [#allocation11], 0 }
   0x7   :  { %17 = vsyncpa [#allocation11 + $0x1], 0 }
   0x8   :  { %18 = vsyncpa [#allocation6], 0 }
   0x9   :  { %20 = vsyncpa [#allocation6 + $0x1], 0  ;;  %s1513_s27 = smov 0   ;;  %s1515_s28 = smov 0  }
   0xa   :  { %s1517_s29 = smov 0   ;;  %s1519_s30 = smov 0  }
   0xb LB: > { %s1534_s9 = sadd.s32 4294967295, %s1451_s30   ;;  %s1137_s10 = sadd.s32 4294967294, %s1451_s30   ;;  %s1451_s30 = sphi %s1519_s30, %s1912_s30   ;;  %s1447_s29 = sphi %s1517_s29, %s1911_s29   ;;  %s1443_s28 = sphi %s1515_s28, %s1910_s28   ;;  %s1439_s27 = sphi %s1513_s27, %s1909_s27  }
   0xc   : > { %p198_p0 = scmp.ne.s32.totalorder %s1443_s28, %s1439_s27  ;;  %p199_p1 = scmp.eq.s32.totalorder %s1534_s9, 0 }
   0xd   : > { %p222_p2 = scmp.eq.s32.totalorder %s1534_s9, 1  ;;  %p228_p3 = scmp.eq.s32.totalorder %s1137_s10, 1 }
   0xe   : > { %p1543_p4 = por %p199_p1, %p198_p0  ;;  %p1138_p5 = scmp.ge.s32.totalorder %s1451_s30, 1 }
   0xf   : > { %p1548_p6 = por %p228_p3, %p198_p0  ;;  %p235_p7 = scmp.lt.s32.totalorder %s1451_s30, 3 }
  0x10   : > { %s1897_s1 = sld [smem:[#allocation19_spill]]  ;;  %s1453_s17 = smov [#allocation7]  }
  0x11   : > { %p1556_p8 = pnand %p1138_p5, %p235_p7  ;;  %s263_s18 = sshll.u32 %s1453_s17, 4  ;;  %s264_s18 = int_to_ptr.vmem [resolvable:$true] %s263_s18 }
  0x12   : > { %s1899_s0 = sld [smem:[#allocation18_spill]]  ;;  %s1454_s23 = smov [#allocation4]  }
  0x13   : > { %p1182_p10 = pneg %p1556_p8  ;;  %s248_s24 = sshll.u32 %s1454_s23, 4  ;;  %s249_s24 = int_to_ptr.vmem [resolvable:$true] %s248_s24 }
  0x14   : > { %s1455_s25 = smov 384   ;;  %s1456_s26 = smov 24  }
  0x15   : > { %p1568_p11 = pnand %p1182_p10, %p199_p1  ;;  %s1901_s2 = sld [smem:[#allocation20_spill]] }
  0x16   : > { %s261_s15 = sshll.u32 %s1897_s1, 4  ;;  %s1457_s17 = smov [#allocation9]   ;;  %s262_s15 = int_to_ptr.hbm [resolvable:$true] %s261_s15 }
  0x17   : > { %1188 = dma.hbm_to_vmem [thread:$0]  (!%p1568_p11), %s262_s15, 48, %s264_s18, [#allocation8]  }
  0x18   : > { %s246_s21 = sshll.u32 %s1899_s0, 4  ;;  %s275_s19 = sshll.u32 %s1457_s17, 4  ;;  %s247_s21 = int_to_ptr.hbm [resolvable:$true] %s246_s21  ;;  %s276_s19 = int_to_ptr.vmem [resolvable:$true] %s275_s19 }
  0x19   : > { %1185 = dma.hbm_to_vmem [thread:$0]  (!%p1568_p11), %s247_s21, 3072, %s249_s24, [#allocation5], %s1455_s25, %s1455_s25, %s1456_s26  }
  0x1a   : > { %s1582_s15 = sadd.s32 1, %s1451_s30   ;;  %s185_s20 = sadd.s32 1, %s1447_s29 }
  0x1b   : > { %s273_s14 = sshll.u32 %s1901_s2, 4  ;;  %s182_s18 = ssub.s32 %s1451_s30, %s1582_s15  ;;  %s274_s14 = int_to_ptr.hbm [resolvable:$true] %s273_s14 }
  0x1c   : > { %1191 = dma.hbm_to_vmem [thread:$0]  (!%p1568_p11), %s274_s14, 32, %s276_s19, [#allocation8]  }
  0x1d   : > { %p183_p12 = scmp.eq.s32.totalorder %s182_s18, 0  ;;  %p192_p13 = scmp.ne.s32.totalorder %s1447_s29, %s1443_s28 }
  0x1e   : > { %p193_p0 = scmp.eq.s32.totalorder %s1451_s30, 0  ;;  %p1203_p3 = scmp.lt.s32.totalorder %s1451_s30, 2 }
  0x1f   : > { %s1592_s21 = scalar_select %p183_p12, %s1447_s29, %s185_s20  }
  0x20   : > { %p194_p5 = por %p193_p0, %p192_p13  ;;  %p1596_p7 = por %p222_p2, %p192_p13 }
  0x21   : > { %1902 = sst [smem:[#allocation17_spill]] %s1592_s21  ;;  %s302_s24 = sand.u32 1, %s1447_s29  }
  0x22   : > { %s1162_s22 = smul.u32 6, %s1451_s30  ;;  %p1605_p10 = pnand %p1203_p3, %p194_p5 }
  0x23   : > { %s1161_s25 = smul.u32 6, %s302_s24  ;;  %s303_s20 = scalar_lea.sflag [#allocation11], %s302_s24 }
  0x24   : > { %s311_s13 = scalar_lea.hbm %s1889_s7, %s1162_s22  ;;  %p1351_p11 = pneg %p1605_p10 }
  0x25   : > { %s313_s17 = sshll.u32 %s311_s13, 4  ;;  %s306_s19 = scalar_lea.vmem [#allocation10], %s1161_s25  ;;  %s314_s17 = int_to_ptr.hbm [resolvable:$true] %s313_s17 }
  0x26   : > { %s315_s18 = sshll.u32 %s306_s19, 4  ;;  %s1347_s0 = sshra.s32 %s314_s17, 4  ;;  %s316_s18 = int_to_ptr.vmem [resolvable:$true] %s315_s18  ;;  %s1348_s0 = int_to_ptr.hbm [resolvable:$true] %s1347_s0 }
  0x27   : > { %s1349_s1 = scalar_lea.hbm %s1348_s0, 6  ;;  %s1354_s10 = scalar_lea.hbm %s1889_s7, 12 }
  0x28   : > { %p1350_p2 = scmp.ne.s32.totalorder %s1348_s0, %s1349_s1  ;;  %p1355_p0 = scmp.lt.s32.totalorder %s1348_s0, %s1889_s7 }
  0x29   : > { %p1356_p3 = scmp.lt.s32.totalorder %s1354_s10, %s1349_s1 }
  0x2a   : > { %p1352_p12 = pnand %p1351_p11, %p1350_p2 }
  0x2b   : > { %p1357_p5 = por %p1356_p3, %p1355_p0 }
  0x2c   : > { %p1353_p13 = pneg %p1352_p12 }
  0x2e   : > { %p1358_p9 = pnand %p1357_p5, %p1353_p13 }
  0x30   : > { %1361 = shalt.err (!%p1358_p9)
}
  0x31   : > { %1195 = dma.hbm_to_vmem [thread:$0]  (!%p1605_p10), %s314_s17, 96, %s316_s18, %s303_s20  }
  0x32   : > { %324 = sbr.rel (%p1556_p8) target bundleno = 1125 (0x465), region = 52 }
  0x37   : > { %1422 = dma.done.wait (%p199_p1), [#allocation5], 3072  }
  0x38   : > { %1424 = vsyncadd (%p199_p1), [#allocation5], 4294964224 }
  0x39   : > { %1426 = dma.done.wait (%p199_p1), [#allocation8], 80  }
  0x3a   : > { %1428 = vsyncadd (%p199_p1), [#allocation8], 4294967216  ;;  %s1630_s0 = sand.u32 1, %s1443_s28  }
  0x3b   : > { %s1163_s1 = smul.u32 6, %s1630_s0  ;;  %s342_s2 = scalar_lea.sflag [#allocation11], %s1630_s0 }
  0x3d   : > { %s1634_s16 = scalar_lea.vmem [#allocation10], %s1163_s1 }
  0x3e   : > { %1430 = dma.done.wait (%p1543_p4), %s342_s2, 96  }
  0x3f   : > { %1432 = vsyncadd (%p1543_p4), %s342_s2, 4294967200  ;;  %p383_p8 = scmp.lt.s32.totalorder %s1534_s9, 1  ;;  %v418_v0 = vld [vmem:[#allocation4 + $0xa8] sm:$0xff]  ;;  %v419_v1 = vld [vmem:[#allocation4 + $0xb0] sm:$0xff]  ;;  %vm421_vm0 = vcmask 523264   ;;  %s1458_s14 = smov 19  }
  0x40   : > { %v420_v2 = vld [vmem:[#allocation4 + $0xb8] sm:$0xff]  ;;  %433 = vmatpush.msra.mxu0 %v418_v0  ;;  %453 = vmatpush.msra.mxu1 %v419_v1  ;;  %v415_v3 = vld [vmem:[#allocation4 + $0x90] sm:$0xff]  ;;  %v417_v5 = vld [vmem:[#allocation4 + $0xa0] sm:$0xff]  ;;  %vm388_vm1 = vcmask 150528   ;;  %v1459_v28 = vmov 0   ;;  %vm390_vm2 = vcmask 699800  }
  0x41   : > { %v416_v4 = vld [vmem:[#allocation4 + $0x98] sm:$0xff]  ;;  %473 = vmatpush.msra.mxu2 %v420_v2  ;;  %v413_v7 = vld [vmem:[#allocation4 + $0x80] sm:$0xff]  ;;  %v414_v8 = vld [vmem:[#allocation4 + $0x88] sm:$0xff]  ;;  %s384_s11 = scalar_select %p383_p8, %s1534_s9, 1  ;;  %389 = vst.msk [vmem:[#allocation2] sm:$0xf] %vm388_vm1, %v1459_v28  ;;  %1255 = vset.pattern.permute.xlu1 %v1459_v28 }
  0x42   : > { %v412_v6 = vld [vmem:[#allocation4 + $0x78] sm:$0xff]  ;;  %434 = vmatpush.msra.mxu0 %v415_v3  ;;  %454 = vmatpush.msra.mxu1 %v416_v4  ;;  %v409_v9 = vld [vmem:[#allocation4 + $0x60] sm:$0xff]  ;;  %v410_v10 = vld [vmem:[#allocation4 + $0x68] sm:$0xff]  ;;  %391 = vst.msk [vmem:[#allocation2 + $0x8] sm:$0xf] %vm390_vm2, %v1459_v28  ;;  %vm502_vm3 = vcmask 1041560  }
  0x43   : > { %474 = vmatpush.msra.mxu2 %v417_v5  ;;  %v411_v11 = vld [vmem:[#allocation4 + $0x70] sm:$0xff]  ;;  %v406_v12 = vld [vmem:[#allocation4 + $0x48] sm:$0xff]  ;;  %v408_v14 = vld [vmem:[#allocation4 + $0x58] sm:$0xff]  ;;  %s1148_s21 = sshll.u32 %s384_s11, 2  ;;  %1256 = vset.pattern.permute.xlu0 %v1459_v28  ;;  %vm503_vm4 = vcmask 1045508   ;;  %vm497_vm5 = vcmask 154624  }
  0x44   : > { %435 = vmatpush.msra.mxu0 %v412_v6  ;;  %455 = vmatpush.msra.mxu1 %v413_v7  ;;  %v407_v13 = vld [vmem:[#allocation4 + $0x50] sm:$0xff]  ;;  %v404_v16 = vld [vmem:[#allocation4 + $0x38] sm:$0xff]  ;;  %v405_v18 = vld [vmem:[#allocation4 + $0x40] sm:$0xff]  ;;  %s386_s13 = scalar_lea.vmem %s1888_s6, %s1148_s21  ;;  %vm506_vm7 = vcmask 410624   ;;  %vm523_vm8 = vcmask 1043610   ;;  %vm524_vm9 = vcmask 1047558  }
  0x45   : > { %475 = vmatpush.msra.mxu2 %v414_v8  ;;  %v403_v15 = vld [vmem:[#allocation4 + $0x30] sm:$0xff]  ;;  %v400_v19 = vld [vmem:[#allocation4 + $0x18] sm:$0xff]  ;;  %v401_v20 = vld [vmem:[#allocation4 + $0x20] sm:$0xff]  ;;  %vm527_vm11 = vcmask 412674   ;;  %s1460_s17 = smov 92   ;;  %s1461_s19 = smov 90  }
  0x46   : > { %436 = vmatpush.msra.mxu0 %v409_v9  ;;  %456 = vmatpush.msra.mxu1 %v410_v10  ;;  %v485_v17 = vld [vmem:[%s1634_s16] sm:$0x3f]  ;;  %vm504_vm6 = vmor %vm503_vm4, %vm502_vm3  ;;  %s1462_s18 = smov 108   ;;  %s1463_s20 = smov 91   ;;  %vm609_vm12 = vcmask 736256   ;;  %vm612_vm13 = vcmask 1043456  }
  0x47   : > { %476 = vmatpush.msra.mxu2 %v411_v11  ;;  %487 = vst [vmem:[#allocation1] ss:$2 sm:$0xff] %v485_v17  ;;  %v402_v21 = vld [vmem:[#allocation4 + $0x28] sm:$0xff]  ;;  %v397_v22 = vld [vmem:[#allocation4] sm:$0xff]  ;;  %v399_v24 = vld [vmem:[#allocation4 + $0x10] sm:$0xff]  ;;  %s1464_s22 = smov 110  }
  0x48   : > { %437 = vmatpush.msra.mxu0 %v406_v12  ;;  %457 = vmatpush.msra.mxu1 %v407_v13  ;;  %v398_v23 = vld [vmem:[#allocation4 + $0x8] sm:$0xff]  ;;  %vm525_vm10 = vmor %vm524_vm9, %vm523_vm8  ;;  %s1465_s26 = smov 109   ;;  %s1466_s10 = smov 126   ;;  %vm591_vm14 = vcmask 752640   ;;  %vm600_vm15 = vcmask 744448   ;;  %vm573_vm1 = vcmask 891904  }
  0x49   : > { %477 = vmatpush.msra.mxu2 %v408_v14  ;;  %v396_v25 = vld [vmem:[%s386_s13] sm:$0xf]  ;;  %s1467_s1 = smov 127   ;;  %vm555_vm2 = vcmask 1031168   ;;  %vm668_vm8 = vcmask 588800   ;;  %vm392_vm9 = vcmask 148480  }
  0x4a   : > { %438 = vmatpush.msra.mxu0 %v403_v15  ;;  %458 = vmatpush.msra.mxu1 %v404_v16  ;;  %393 = vst.msk [vmem:[#allocation3] sm:$0x3] %vm392_vm9, %v1459_v28  ;;  %s1165_s13 = smul.u32 12, %s1534_s9  ;;  %s1008_s9 = scalar_lea.sflag [#allocation6], %s1630_s0 }
  0x4b   : > { %478 = vmatpush.msra.mxu2 %v405_v18  ;;  %s1397_s11 = scalar_lea.hbm %s1890_s8, 24 }
  0x4c   : > { %439 = vmatpush.msra.mxu0 %v400_v19  ;;  %459 = vmatpush.msra.mxu1 %v401_v20  ;;  %v662_v19 = vld [vmem:[%s1885_s3] sm:$0xf] }
  0x4d   : > { %479 = vmatpush.msra.mxu2 %v402_v21 }
  0x4e   : > { %440 = vmatpush.msra.mxu0 %v397_v22  ;;  %460 = vmatpush.msra.mxu1 %v398_v23  ;;  %v488_v26 = vld.sshfl [vmem:[#allocation1] sm:$0xff pattern:$0x75643120]  ;;  %v490_v27 = vld.sshfl [vmem:[#allocation1 + $0x8] sm:$0xff pattern:$0x75643120] }
  0x4f   : > { %480 = vmatpush.msra.mxu2 %v399_v24  ;;  %1149 = vmatmul.msk.f32.vlgmr.msra.gmra.mxu0 %vm421_vm0, %v396_v25 }
  0x50   : > { %1150 = vmatmul.msk.f32.vlgmr.msra.gmra.mxu1 %vm421_vm0, %v396_v25  ;;  %1151 = vmatmul.msk.f32.vlgmr.msra.gmra.mxu2 %vm421_vm0, %v396_v25  ;;  %vm582_vm0 = vcmask 883712   ;;  %v661_v25 = vld [vmem:[#allocation9] sm:$0x3] }
  0x51   : > { %492 = vrot.lane.b32.xlu0 %v488_v26, %s1458_s14  ;;  %494 = vrot.lane.b32.xlu1 %v490_v27, %s1458_s14 }
  0xc3   : > { %v493_v29 = vpop.permute.xlu0 %492  ;;  %v495_v30 = vpop.permute.xlu1 %494 }
  0xc4   : > { %v496_v31 = vrot.slane %v493_v29, 4 }
  0xc6   : > { %v498_v32 = vsel %vm497_vm5, %v496_v31, %v493_v29  ;;  %v499_v33 = vsel %vm497_vm5, %v496_v31, %v495_v30 }
  0xc7   : > { %505 = vst.msk [vmem:[#allocation2] sm:$0x33] %vm504_vm6, %v498_v32  ;;  %vm1891_vm6 = vcmask 900096  }
  0xc8   : > { %507 = vst.msk [vmem:[#allocation2 + $0x8] sm:$0x3] %vm506_vm7, %v499_v33  ;;  %vm546_vm7 = vcmask 1039360  }
  0xcc   : > { %v442_v34 = vpop.f32.mrf.mxu0 }
  0xcd   : > { %v462_v35 = vpop.f32.mrf.mxu1 }
  0xce   : > { %v508_v36 = vpack.c.bf16 %v462_v35, %v442_v34 }
  0xd0   : > { %v512_v37 = vrot.slane %v508_v36, 6 }
  0xd2   : > { %514 = vrot.lane.b32.xlu0 %v512_v37, %s1458_s14 }
  0xd3   : > { %v482_v38 = vpop.f32.mrf.mxu2 }
  0xd4   : > { %v509_v39 = vpack.c.bf16 %v482_v38, %v482_v38 }
  0xd6   : > { %v513_v40 = vrot.slane %v509_v39, 6 }
  0xd8   : > { %516 = vrot.lane.b32.xlu1 %v513_v40, %s1458_s14 }
 0x144   : > { %v515_v41 = vpop.permute.xlu0 %514 }
 0x145   : > { %v518_v42 = vrot.slane %v515_v41, 4 }
 0x147   : > { %v519_v43 = vsel %vm497_vm5, %v518_v42, %v515_v41 }
 0x148   : > { %526 = vst.msk [vmem:[#allocation2] sm:$0xcc] %vm525_vm10, %v519_v43  ;;  %vm394_vm10 = vcmask 697752  }
 0x149   : > { %395 = vst.msk [vmem:[#allocation3 + $0x4] sm:$0x3] %vm394_vm10, %v1459_v28  ;;  %vm756_vm10 = vcmask 414724  }
 0x14a   : > { %v517_v44 = vpop.permute.xlu1 %516 }
 0x14b   : > { %v520_v45 = vsel %vm497_vm5, %v518_v42, %v517_v44 }
 0x14c   : > { %528 = vst.msk [vmem:[#allocation2 + $0x8] sm:$0xc] %vm527_vm11, %v520_v45  ;;  %vm740_vm11 = vcmask 1041408  }
 0x14f   : > { %v530_v46 = vld [vmem:[#allocation2] sm:$0xff] }
 0x150   : > { %v534_v47 = vunpack.c.l.b16 %v530_v46  ;;  %v535_v48 = vunpack.c.h.b16 %v530_v46 }
 0x152   : > { %v1662_v49 = vpack.c.b16 %v534_v47, %v534_v47  ;;  %v1664_v50 = vpack.c.b16 %v535_v48, %v535_v48 }
 0x153   : > { %v531_v51 = vld [vmem:[#allocation2 + $0x8] sm:$0xf] }
 0x154   : > { %587 = vrot.lane.b32.xlu1 %v1664_v50, %s1460_s17  ;;  %585 = vrot.lane.b32.xlu0 %v1662_v49, %s1460_s17  ;;  %v536_v52 = vunpack.c.l.b16 %v531_v51 }
 0x155   : > { %603 = vrot.lane.b32.xlu2 %v1662_v49, %s1461_s19 }
 0x156   : > { %v1684_v53 = vpack.c.b16 %v536_v52, %v536_v52 }
 0x15c   : > { %576 = vrot.lane.b32.xlu1 %v1662_v49, %s1462_s18  ;;  %596 = vrot.lane.b32.xlu0 %v1664_v50, %s1463_s20 }
 0x15d   : > { %605 = vrot.lane.b32.xlu2 %v1664_v50, %s1461_s19 }
 0x164   : > { %558 = vrot.lane.b32.xlu1 %v1662_v49, %s1464_s22  ;;  %569 = vrot.lane.b32.xlu0 %v1664_v50, %s1465_s26 }
 0x165   : > { %594 = vrot.lane.b32.xlu2 %v1662_v49, %s1463_s20 }
 0x16c   : > { %607 = vrot.lane.b32.xlu1 %v1684_v53, %s1461_s19  ;;  %551 = vrot.lane.b32.xlu0 %v1664_v50, %s1466_s10 }
 0x16d   : > { %567 = vrot.lane.b32.xlu2 %v1662_v49, %s1465_s26 }
 0x174   : > { %598 = vrot.lane.b32.xlu1 %v1684_v53, %s1463_s20  ;;  %542 = vrot.lane.b32.xlu0 %v1664_v50, %s1467_s1 }
 0x175   : > { %578 = vrot.lane.b32.xlu2 %v1664_v50, %s1462_s18 }
 0x17c   : > { %580 = vrot.lane.b32.xlu1 %v1684_v53, %s1462_s18  ;;  %589 = vrot.lane.b32.xlu0 %v1684_v53, %s1460_s17 }
 0x17d   : > { %549 = vrot.lane.b32.xlu2 %v1662_v49, %s1466_s10 }
 0x184   : > { %553 = vrot.lane.b32.xlu1 %v1684_v53, %s1466_s10  ;;  %571 = vrot.lane.b32.xlu0 %v1684_v53, %s1465_s26 }
 0x185   : > { %560 = vrot.lane.b32.xlu2 %v1664_v50, %s1464_s22 }
 0x18c   : > { %544 = vrot.lane.b32.xlu0 %v1684_v53, %s1467_s1  ;;  %665 = vperm.xlu1 %1255, %v662_v19  }
 0x18d   : > { %540 = vrot.lane.b32.xlu2 %v1662_v49, %s1467_s1 }
 0x195   : > { %562 = vrot.lane.b32.xlu2 %v1684_v53, %s1464_s22 }
 0x1af   : > { %v604_v54 = vpop.permute.xlu2 %603 }
 0x1b7   : > { %v606_v55 = vpop.permute.xlu2 %605 }
 0x1b8   : > { %v610_v56 = vsel %vm609_vm12, %v604_v54, %v606_v55 }
 0x1b9   : > { %v673_v57 = vsel %vm612_vm13, %v610_v56, 0 }
 0x1ba   : > { %684 = vmatpush.bf16.msra.mxu3 %v673_v57 }
 0x1bf   : > { %v595_v58 = vpop.permute.xlu2 %594 }
 0x1c6   : > { %v588_v59 = vpop.permute.xlu1 %587  ;;  %v586_v60 = vpop.permute.xlu0 %585 }
 0x1c7   : > { %v568_v61 = vpop.permute.xlu2 %567  ;;  %v592_v0 = vsel %vm591_vm14, %v586_v60, %v588_v59 }
 0x1ce   : > { %v577_v62 = vpop.permute.xlu1 %576  ;;  %v597_v63 = vpop.permute.xlu0 %596 }
 0x1cf   : > { %v601_v1 = vsel %vm600_vm15, %v595_v58, %v597_v63  ;;  %v579_v2 = vpop.permute.xlu2 %578 }
 0x1d0   : > { %v651_v3 = vsel %vm612_vm13, %v592_v0, %v601_v1  ;;  %v583_v6 = vsel %vm582_vm0, %v577_v62, %v579_v2 }
 0x1d1   : > { %685 = vmatpush.bf16.msra.mxu3 %v651_v3 }
 0x1d6   : > { %v559_v4 = vpop.permute.xlu1 %558  ;;  %v570_v5 = vpop.permute.xlu0 %569 }
 0x1d7   : > { %v574_v7 = vsel %vm573_vm1, %v568_v61, %v570_v5  ;;  %v550_v8 = vpop.permute.xlu2 %549 }
 0x1d8   : > { %v639_v9 = vsel %vm612_vm13, %v574_v7, %v583_v6 }
 0x1d9   : > { %686 = vmatpush.bf16.msra.mxu3 %v639_v9 }
 0x1de   : > { %v608_v10 = vpop.permute.xlu1 %607  ;;  %v552_v11 = vpop.permute.xlu0 %551 }
 0x1df   : > { %v556_v12 = vsel %vm555_vm2, %v550_v8, %v552_v11  ;;  %v561_v13 = vpop.permute.xlu2 %560  ;;  %v679_v14 = vsel %vm612_vm13, %v608_v10, 0  ;;  %v611_v15 = vsel %vm609_vm12, %v606_v55, %v608_v10 }
 0x1e0   : > { %v565_v16 = vsel %vm1891_vm6, %v559_v4, %v561_v13  ;;  %710 = vmatpush.bf16.msrb.mxu1 %v679_v14  ;;  %v676_v17 = vsel %vm612_vm13, %v611_v15, 0 }
 0x1e1   : > { %v627_v18 = vsel %vm612_vm13, %v556_v12, %v565_v16  ;;  %697 = vmatpush.bf16.msrb.mxu0 %v676_v17 }
 0x1e2   : > { %687 = vmatpush.bf16.msra.mxu3 %v627_v18 }
 0x1e6   : > { %v599_v20 = vpop.permute.xlu1 %598  ;;  %v543_v21 = vpop.permute.xlu0 %542 }
 0x1e7   : > { %v541_v22 = vpop.permute.xlu2 %540  ;;  %v602_v29 = vsel %vm600_vm15, %v597_v63, %v599_v20 }
 0x1e8   : > { %v547_v23 = vsel %vm546_vm7, %v541_v22, %v543_v21 }
 0x1e9   : > { %v615_v24 = vsel %vm612_vm13, %v1662_v49, %v547_v23 }
 0x1ea   : > { %688 = vmatpush.bf16.msra.mxu3 %v615_v24 }
 0x1ed   : > { %1152 = vmatmul.msk.bf16.vlgmr.msra.gmra.mxu3 %vm668_vm8, %v661_v25 }
 0x1ee   : > { %v581_v26 = vpop.permute.xlu1 %580  ;;  %v590_v27 = vpop.permute.xlu0 %589 }
 0x1ef   : > { %v593_v30 = vsel %vm591_vm14, %v588_v59, %v590_v27  ;;  %v659_v31 = vsel %vm612_vm13, %v590_v27, %v599_v20  ;;  %v584_v35 = vsel %vm582_vm0, %v579_v2, %v581_v26  ;;  %v563_v38 = vpop.permute.xlu2 %562 }
 0x1f0   : > { %711 = vmatpush.bf16.msrb.mxu1 %v659_v31  ;;  %v655_v32 = vsel %vm612_vm13, %v593_v30, %v602_v29  ;;  %v566_v41 = vsel %vm1891_vm6, %v561_v13, %v563_v38 }
 0x1f1   : > { %698 = vmatpush.bf16.msrb.mxu0 %v655_v32 }
 0x1f6   : > { %v554_v33 = vpop.permute.xlu1 %553  ;;  %v572_v34 = vpop.permute.xlu0 %571 }
 0x1f7   : > { %v575_v36 = vsel %vm573_vm1, %v570_v5, %v572_v34  ;;  %v647_v37 = vsel %vm612_vm13, %v572_v34, %v581_v26  ;;  %v557_v40 = vsel %vm555_vm2, %v552_v11, %v554_v33  ;;  %v635_v42 = vsel %vm612_vm13, %v554_v33, %v563_v38 }
 0x1f8   : > { %712 = vmatpush.bf16.msrb.mxu1 %v647_v37  ;;  %v643_v39 = vsel %vm612_vm13, %v575_v36, %v584_v35  ;;  %v631_v43 = vsel %vm612_vm13, %v557_v40, %v566_v41 }
 0x1f9   : > { %699 = vmatpush.bf16.msrb.mxu0 %v643_v39 }
 0x1fc   : > { %713 = vmatpush.bf16.msrb.mxu1 %v635_v42 }
 0x1fd   : > { %700 = vmatpush.bf16.msrb.mxu0 %v631_v43 }
 0x1fe   : > { %v545_v44 = vpop.permute.xlu0 %544  ;;  %v666_v51 = vpop.permute.xlu1 %665 }
 0x1ff   : > { %v548_v45 = vsel %vm546_vm7, %v543_v21, %v545_v44  ;;  %v623_v46 = vsel %vm612_vm13, %v1684_v53, %v545_v44  ;;  %v529_v53 = vld [vmem:[#allocation7] sm:$0x7] }
 0x200   : > { %714 = vmatpush.bf16.msrb.mxu1 %v623_v46  ;;  %v619_v47 = vsel %vm612_vm13, %v1664_v50, %v548_v45  ;;  %v724_v55 = vperm.slane %v529_v53, 0  ;;  %v726_v50 = vperm.slane %v529_v53, 2  ;;  %v725_v60 = vperm.slane %v529_v53, 1 }
 0x201   : > { %701 = vmatpush.bf16.msrb.mxu0 %v619_v47 }
 0x203   : > { %1154 = vmatmul.msk.bf16.vlgmr.msrb.gmra.mxu1 %vm668_vm8, %v661_v25 }
 0x204   : > { %1153 = vmatmul.msk.bf16.vlgmr.msrb.gmra.mxu0 %vm668_vm8, %v661_v25  ;;  %vm754_vm8 = vcmask 1043458  }
 0x205   : > { %vm755_vm9 = vmor %vm754_vm8, %vm502_vm3  ;;  %vm903_vm3 = vcmask 1045504  }
 0x206   : > { %vm757_vm6 = vmor %vm756_vm10, %vm755_vm9 }
 0x270   : > { %v690_v48 = vpop.f32.mrf.mxu3 }
 0x271   : > { %v691_v52 = vadd.f32 %v690_v48, %v666_v51 }
 0x273   : > { %v720_v56 = vmax.f32 %v691_v52, 0.0 }
 0x275   : > { %v730_v62 = vmul.f32 %v724_v55, %v720_v56 }
 0x278   : > { %v692_v49 = vpop.f32.mrf.mxu3 }
 0x280   : > { %v716_v54 = vpop.f32.mrf.mxu1 }
 0x281   : > { %v717_v57 = vadd.f32 %v716_v54, %v666_v51  ;;  %v703_v58 = vpop.f32.mrf.mxu0 }
 0x282   : > { %v704_v59 = vadd.f32 %v703_v58, %v666_v51  ;;  %v938_v58 = vld [vmem:[%s1887_s5] sm:$0xf] }
 0x283   : > { %v722_v61 = vmax.f32 %v717_v57, 0.0 }
 0x284   : > { %v721_v63 = vmax.f32 %v704_v59, 0.0 }
 0x285   : > { %v732_v0 = vmul.f32 %v726_v50, %v722_v61 }
 0x286   : > { %v731_v1 = vmul.f32 %v725_v60, %v721_v63 }
 0x287   : > { %v734_v2 = vpack.c.bf16 %v732_v0, %v732_v0 }
 0x288   : > { %v733_v3 = vpack.c.bf16 %v731_v1, %v730_v62  ;;  %v718_v28 = vpop.f32.mrf.mxu1 }
 0x289   : > { %v705_v4 = vpop.f32.mrf.mxu0  ;;  %v738_v5 = vrot.slane %v734_v2, 4  ;;  %v739_v6 = vrot.slane %v734_v2, 6 }
 0x28a   : > { %v737_v7 = vrot.slane %v733_v3, 2 }
 0x28b   : > { %v746_v8 = vsel %vm503_vm4, %v738_v5, %v739_v6  ;;  %vm1905_vm4 = vcmask 900096  }
 0x28c   : > { %v743_v9 = vsel %vm740_vm11, %v733_v3, %v737_v7 }
 0x28d   : > { %v747_v10 = vsel %vm612_vm13, %v743_v9, %v746_v8 }
 0x28e   : > { %749 = vrot.lane.b32.xlu2 %v747_v10, %s1458_s14  ;;  %s1164_s14 = smul.u32 12, %s1630_s0 }
 0x2e8   : > { %v750_v11 = vpop.permute.xlu2 %749 }
 0x2e9   : > { %v751_v12 = vrot.slane %v750_v11, 6 }
 0x2eb   : > { %v752_v13 = vsel %vm497_vm5, %v751_v12, %v750_v11  ;;  %v937_v12 = vld [vmem:[%s1886_s4] sm:$0x3]  ;;  %vm944_vm5 = vcmask 293888  }
 0x2ec   : > { %758 = vst.msk [vmem:[#allocation3] sm:$0x3f] %vm757_vm6, %v752_v13 }
 0x2f3   : > { %v759_v14 = vld [vmem:[#allocation3] sm:$0x3f] }
 0x2f4   : > { %761 = vst [vmem:[#allocation1] ss:$4 sm:$0xff] %v759_v14 }
 0x2fb   : > { %v1764_v15 = vld.sshfl [vmem:[#allocation1] sm:$0xff pattern:$0x73625140]  ;;  %v1766_v16 = vld.sshfl [vmem:[#allocation1 + $0x8] sm:$0xff pattern:$0x73625140] }
 0x2fc   : > { %v1768_v17 = vld.sshfl [vmem:[#allocation1 + $0x10] sm:$0xff pattern:$0x73625140] }
 0x2fd   : > { %766 = vst [vmem:[#allocation1 + $0x1] ss:$4 sm:$0xff] %v759_v14 }
 0x304   : > { %v769_v18 = vld.sshfl [vmem:[#allocation1 + $0x8] sm:$0xff pattern:$0x73625140]  ;;  %v767_v19 = vld.sshfl [vmem:[#allocation1] sm:$0xff pattern:$0x73625140] }
 0x305   : > { %775 = vrot.lane.b32.xlu2 %v769_v18, %s1467_s1  ;;  %773 = vrot.lane.b32.xlu1 %v767_v19, %s1467_s1  ;;  %v771_v20 = vld.sshfl [vmem:[#allocation1 + $0x10] sm:$0xff pattern:$0x73625140] }
 0x306   : > { %782 = vst [vmem:[#allocation1 + $0x2] ss:$4 sm:$0xff] %v759_v14 }
 0x30d   : > { %v785_v21 = vld.sshfl [vmem:[#allocation1 + $0x8] sm:$0xff pattern:$0x73625140]  ;;  %v787_v22 = vld.sshfl [vmem:[#allocation1 + $0x10] sm:$0xff pattern:$0x73625140] }
 0x30e   : > { %791 = vrot.lane.b32.xlu1 %v785_v21, %s1466_s10  ;;  %v783_v23 = vld.sshfl [vmem:[#allocation1] sm:$0xff pattern:$0x73625140] }
 0x30f   : > { %789 = vrot.lane.b32.xlu0 %v783_v23, %s1466_s10  ;;  %798 = vst [vmem:[#allocation1 + $0x3] ss:$4 sm:$0xff] %v759_v14 }
 0x316   : > { %v801_v24 = vld.sshfl [vmem:[#allocation1 + $0x8] sm:$0xff pattern:$0x73625140]  ;;  %v803_v25 = vld.sshfl [vmem:[#allocation1 + $0x10] sm:$0xff pattern:$0x73625140] }
 0x317   : > { %v799_v26 = vld.sshfl [vmem:[#allocation1] sm:$0xff pattern:$0x73625140] }
 0x318   : > { %805 = vrot.lane.b32.xlu2 %v799_v26, %s1464_s22  ;;  %813 = vst [vmem:[#allocation1] ss:$4 sm:$0xff] %v759_v14 }
 0x31f   : > { %v814_v27 = vld.sshfl [vmem:[#allocation1] sm:$0xff pattern:$0x73625140]  ;;  %v816_v29 = vld.sshfl [vmem:[#allocation1 + $0x8] sm:$0xff pattern:$0x73625140] }
 0x320   : > { %v818_v30 = vld.sshfl [vmem:[#allocation1 + $0x10] sm:$0xff pattern:$0x73625140]  ;;  %822 = vrot.lane.b32.xlu0 %v816_v29, %s1465_s26  ;;  %820 = vrot.lane.b32.xlu2 %v814_v27, %s1465_s26 }
 0x321   : > { %829 = vst [vmem:[#allocation1 + $0x1] ss:$4 sm:$0xff] %v759_v14 }
 0x328   : > { %v830_v31 = vld.sshfl [vmem:[#allocation1] sm:$0xff pattern:$0x73625140]  ;;  %v832_v32 = vld.sshfl [vmem:[#allocation1 + $0x8] sm:$0xff pattern:$0x73625140] }
 0x329   : > { %v834_v33 = vld.sshfl [vmem:[#allocation1 + $0x10] sm:$0xff pattern:$0x73625140]  ;;  %838 = vrot.lane.b32.xlu2 %v832_v32, %s1462_s18  ;;  %836 = vrot.lane.b32.xlu1 %v830_v31, %s1462_s18 }
 0x32a   : > { %845 = vst [vmem:[#allocation1 + $0x2] ss:$4 sm:$0xff] %v759_v14 }
 0x331   : > { %v846_v34 = vld.sshfl [vmem:[#allocation1] sm:$0xff pattern:$0x73625140]  ;;  %v848_v35 = vld.sshfl [vmem:[#allocation1 + $0x8] sm:$0xff pattern:$0x73625140] }
 0x332   : > { %v850_v36 = vld.sshfl [vmem:[#allocation1 + $0x10] sm:$0xff pattern:$0x73625140]  ;;  %854 = vrot.lane.b32.xlu1 %v848_v35, %s1460_s17  ;;  %852 = vrot.lane.b32.xlu0 %v846_v34, %s1460_s17 }
 0x333   : > { %861 = vst [vmem:[#allocation1 + $0x3] ss:$4 sm:$0xff] %v759_v14 }
 0x33a   : > { %v866_v37 = vld.sshfl [vmem:[#allocation1 + $0x10] sm:$0xff pattern:$0x73625140]  ;;  %v864_v38 = vld.sshfl [vmem:[#allocation1 + $0x8] sm:$0xff pattern:$0x73625140] }
 0x33b   : > { %870 = vrot.lane.b32.xlu0 %v864_v38, %s1463_s20  ;;  %v862_v39 = vld.sshfl [vmem:[#allocation1] sm:$0xff pattern:$0x73625140] }
 0x33c   : > { %868 = vrot.lane.b32.xlu2 %v862_v39, %s1463_s20  ;;  %876 = vst [vmem:[#allocation1] ss:$4 sm:$0xff] %v759_v14 }
 0x343   : > { %v879_v40 = vld.sshfl [vmem:[#allocation1 + $0x8] sm:$0xff pattern:$0x73625140]  ;;  %v877_v41 = vld.sshfl [vmem:[#allocation1] sm:$0xff pattern:$0x73625140] }
 0x344   : > { %824 = vrot.lane.b32.xlu2 %v818_v30, %s1465_s26  ;;  %885 = vrot.lane.b32.xlu1 %v879_v40, %s1461_s19  ;;  %v881_v42 = vld.sshfl [vmem:[#allocation1 + $0x10] sm:$0xff pattern:$0x73625140] }
 0x345   : > { %883 = vrot.lane.b32.xlu0 %v877_v41, %s1461_s19 }
 0x34c   : > { %872 = vrot.lane.b32.xlu2 %v866_v37, %s1463_s20  ;;  %856 = vrot.lane.b32.xlu1 %v850_v36, %s1460_s17  ;;  %s382_s20 = scalar_lea.vmem [#allocation12], %s1164_s14 }
 0x34d   : > { %807 = vrot.lane.b32.xlu0 %v801_v24, %s1464_s22 }
 0x354   : > { %809 = vrot.lane.b32.xlu2 %v803_v25, %s1464_s22  ;;  %887 = vrot.lane.b32.xlu1 %v881_v42, %s1461_s19  ;;  %s1021_s22 = sshll.u32 %s382_s20, 4  ;;  %s1022_s22 = int_to_ptr.vmem [resolvable:$true] %s1021_s22 }
 0x355   : > { %840 = vrot.lane.b32.xlu0 %v834_v33, %s1462_s18  ;;  %s1019_s18 = scalar_lea.hbm %s1890_s8, %s1165_s13 }
 0x356   : > { %s1023_s26 = sshll.u32 %s1019_s18, 4  ;;  %s1024_s26 = int_to_ptr.hbm [resolvable:$true] %s1023_s26 }
 0x35c   : > { %793 = vrot.lane.b32.xlu1 %v787_v22, %s1466_s10  ;;  %s1391_s10 = sshra.s32 %s1024_s26, 4  ;;  %s1392_s10 = int_to_ptr.hbm [resolvable:$true] %s1391_s10 }
 0x35d   : > { %777 = vrot.lane.b32.xlu0 %v771_v20, %s1467_s1  ;;  %s1393_s1 = scalar_lea.hbm %s1392_s10, 12  ;;  %p1398_p10 = scmp.lt.s32.totalorder %s1392_s10, %s1890_s8 }
 0x35e   : > { %p1394_p1 = scmp.ne.s32.totalorder %s1392_s10, %s1393_s1  ;;  %p1399_p2 = scmp.lt.s32.totalorder %s1397_s11, %s1393_s1 }
 0x35f   : > { %v1794_v43 = vpop.permute.xlu2 %775 }
 0x360   : > { %p1395_p4 = pnand %p1394_p1, %p1596_p7  ;;  %p1400_p11 = por %p1399_p2, %p1398_p10 }
 0x362   : > { %p1396_p9 = pneg %p1395_p4 }
 0x364   : > { %p1401_p12 = pnand %p1400_p11, %p1396_p9 }
 0x365   : > { %941 = vperm.xlu0 %1256, %v938_v58  }
 0x372   : > { %v806_v46 = vpop.permute.xlu2 %805 }
 0x377   : > { %v774_v44 = vpop.permute.xlu1 %773 }
 0x378   : > { %v779_v2 = vsel %vm546_vm7, %v774_v44, %v1794_v43 }
 0x379   : > { %v892_v7 = vsel %vm740_vm11, %v1764_v15, %v779_v2 }
 0x37a   : > { %v821_v49 = vpop.permute.xlu2 %820 }
 0x380   : > { %v792_v47 = vpop.permute.xlu1 %791 }
 0x381   : > { %v790_v45 = vpop.permute.xlu0 %789 }
 0x382   : > { %v795_v28 = vsel %vm555_vm2, %v790_v45, %v792_v47 }
 0x383   : > { %v839_v53 = vpop.permute.xlu2 %838  ;;  %v898_v10 = vsel %vm612_vm13, %v892_v7, %v795_v28 }
 0x392   : > { %v823_v48 = vpop.permute.xlu0 %822 }
 0x393   : > { %v826_v63 = vsel %vm573_vm1, %v821_v49, %v823_v48 }
 0x396   : > { %v869_v56 = vpop.permute.xlu2 %868 }
 0x39b   : > { %v837_v51 = vpop.permute.xlu1 %836 }
 0x39c   : > { %v842_v59 = vsel %vm582_vm0, %v837_v51, %v839_v53 }
 0x39d   : > { %v915_v1 = vsel %vm740_vm11, %v826_v63, %v842_v59 }
 0x39e   : > { %v825_v4 = vpop.permute.xlu2 %824 }
 0x39f   : > { %v827_v20 = vsel %vm573_vm1, %v823_v48, %v825_v4 }
 0x3a4   : > { %v853_v52 = vpop.permute.xlu0 %852  ;;  %v855_v55 = vpop.permute.xlu1 %854 }
 0x3a5   : > { %v858_v61 = vsel %vm591_vm14, %v853_v52, %v855_v55 }
 0x3a6   : > { %v923_v3 = vsel %vm612_vm13, %v915_v1, %v858_v61  ;;  %v873_v14 = vpop.permute.xlu2 %872 }
 0x3ad   : > { %v871_v54 = vpop.permute.xlu0 %870 }
 0x3ae   : > { %v874_v0 = vsel %vm600_vm15, %v869_v56, %v871_v54  ;;  %v875_v29 = vsel %vm600_vm15, %v871_v54, %v873_v14  ;;  %v810_v37 = vpop.permute.xlu2 %809 }
 0x3af   : > { %v929_v5 = vsel %vm903_vm3, %v923_v3, %v874_v0 }
 0x3b6   : > { %v886_v50 = vpop.permute.xlu1 %885 }
 0x3b7   : > { %v884_v57 = vpop.permute.xlu0 %883 }
 0x3b8   : > { %v889_v60 = vsel %vm609_vm12, %v884_v57, %v886_v50 }
 0x3b9   : > { %v949_v62 = vsel %vm740_vm11, %v889_v60, 0 }
 0x3ba   : > { %962 = vmatpush.bf16.msrb.mxu2 %v949_v62 }
 0x3be   : > { %963 = vmatpush.bf16.msrb.mxu2 %v929_v5  ;;  %v857_v6 = vpop.permute.xlu1 %856 }
 0x3bf   : > { %v808_v8 = vpop.permute.xlu0 %807  ;;  %v859_v24 = vsel %vm591_vm14, %v855_v55, %v857_v6  ;;  %vm1005_vm14 = vcmask 257024  }
 0x3c0   : > { %v811_v9 = vsel %vm1905_vm4, %v806_v46, %v808_v8 }
 0x3c1   : > { %v905_v11 = vsel %vm903_vm3, %v898_v10, %v811_v9 }
 0x3c2   : > { %964 = vmatpush.bf16.msrb.mxu2 %v905_v11 }
 0x3c5   : > { %1155 = vmatmul.msk.bf16.vlgmr.msrb.gmra.mxu2 %vm944_vm5, %v937_v12 }
 0x3c6   : > { %v888_v13 = vpop.permute.xlu1 %887 }
 0x3c7   : > { %v955_v18 = vsel %vm740_vm11, %v888_v13, 0  ;;  %v841_v15 = vpop.permute.xlu0 %840  ;;  %v890_v19 = vsel %vm609_vm12, %v886_v50, %v888_v13  ;;  %vm1906_vm12 = vmmov %vm1905_vm4 }
 0x3c8   : > { %v843_v21 = vsel %vm582_vm0, %v839_v53, %v841_v15  ;;  %v921_v22 = vsel %vm740_vm11, %v825_v4, %v841_v15  ;;  %988 = vmatpush.bf16.msra.mxu2 %v955_v18  ;;  %v952_v23 = vsel %vm740_vm11, %v890_v19, 0  ;;  %v812_v40 = vsel %vm1906_vm12, %v808_v8, %v810_v37 }
 0x3c9   : > { %v918_v25 = vsel %vm740_vm11, %v827_v20, %v843_v21  ;;  %975 = vmatpush.bf16.msrb.mxu3 %v952_v23  ;;  %v927_v26 = vsel %vm612_vm13, %v921_v22, %v857_v6 }
 0x3ca   : > { %v925_v27 = vsel %vm612_vm13, %v918_v25, %v859_v24  ;;  %v935_v30 = vsel %vm903_vm3, %v927_v26, %v873_v14 }
 0x3cb   : > { %v932_v31 = vsel %vm903_vm3, %v925_v27, %v875_v29 }
 0x3cc   : > { %989 = vmatpush.bf16.msra.mxu2 %v935_v30 }
 0x3cd   : > { %976 = vmatpush.bf16.msrb.mxu3 %v932_v31 }
 0x3ce   : > { %v794_v32 = vpop.permute.xlu1 %793 }
 0x3cf   : > { %v796_v33 = vsel %vm555_vm2, %v792_v47, %v794_v32  ;;  %v778_v34 = vpop.permute.xlu0 %777 }
 0x3d0   : > { %v780_v35 = vsel %vm546_vm7, %v1794_v43, %v778_v34  ;;  %v896_v36 = vsel %vm740_vm11, %v1768_v17, %v778_v34 }
 0x3d1   : > { %v894_v38 = vsel %vm740_vm11, %v1766_v16, %v780_v35  ;;  %v902_v39 = vsel %vm612_vm13, %v896_v36, %v794_v32 }
 0x3d2   : > { %v911_v41 = vsel %vm903_vm3, %v902_v39, %v810_v37  ;;  %v900_v42 = vsel %vm612_vm13, %v894_v38, %v796_v33 }
 0x3d3   : > { %990 = vmatpush.bf16.msra.mxu2 %v911_v41  ;;  %v908_v44 = vsel %vm903_vm3, %v900_v42, %v812_v40 }
 0x3d4   : > { %977 = vmatpush.bf16.msrb.mxu3 %v908_v44 }
 0x3d6   : > { %1157 = vmatmul.msk.bf16.vlgmr.msra.gmra.mxu2 %vm944_vm5, %v937_v12 }
 0x3d7   : > { %1156 = vmatmul.msk.bf16.vlgmr.msrb.gmra.mxu3 %vm944_vm5, %v937_v12  ;;  %v942_v16 = vpop.permute.xlu0 %941 }
 0x448   : > { %v966_v17 = vpop.f32.mrf.mxu2 }
 0x449   : > { %v967_v48 = vadd.f32 %v966_v17, %v942_v16 }
 0x44b   : > { %v996_v53 = vmax.f32 %v967_v48, 0.0 }
 0x450   : > { %v968_v43 = vpop.f32.mrf.mxu2 }
 0x459   : > { %v992_v45 = vpop.f32.mrf.mxu2 }
 0x45a   : > { %v993_v46 = vadd.f32 %v992_v45, %v942_v16  ;;  %v979_v47 = vpop.f32.mrf.mxu3 }
 0x45b   : > { %v980_v49 = vadd.f32 %v979_v47, %v942_v16 }
 0x45c   : > { %v998_v51 = vmax.f32 %v993_v46, 0.0 }
 0x45d   : > { %v997_v52 = vmax.f32 %v980_v49, 0.0 }
 0x45e   : > { %1006 = vst.msk [vmem:[%s382_s20 + $0x8] sm:$0xf] %vm1005_vm14, %v998_v51 }
 0x45f   : > { %v1001_v54 = vrot.slane %v997_v52, 4 }
 0x461   : > { %v1002_v55 = vsel %vm612_vm13, %v996_v53, %v1001_v54  ;;  %v994_v56 = vpop.f32.mrf.mxu2 }
 0x462   : > { %1004 = vst [vmem:[%s382_s20] sm:$0xff] %v1002_v55  ;;  %v981_v50 = vpop.f32.mrf.mxu3 }
 0x463   : > { %1404 = shalt.err (!%p1401_p12)
}
 0x464   : > { %1180 = dma.vmem_to_hbm [thread:$0]  (%p1596_p7), %s1022_s22, 192, %s1024_s26, %s1008_s9  }
 0x465 PF: > { %s1035_s0 = sand.u32 1, %s1439_s27   ;;  %p1907_p13 = scmp.ge.s32.totalorder %s1451_s30, 2 }
 0x466   : > { %s1036_s25 = scalar_lea.sflag [#allocation6], %s1035_s0 }
 0x467   : > { %p1197_p0 = pnand %p1907_p13, %p1548_p6 }
 0x469   : > { %p1198_p3 = pneg %p1197_p0 }
 0x46b   : > { %1434 = dma.done.wait (%p1198_p3), %s1036_s25, 192  }
 0x46c   : > { %1436 = vsyncadd (%p1198_p3), %s1036_s25, 4294967104  ;;  %s1908_s13 = sld [smem:[#allocation17_spill]]  ;;  %p23_p5 = scmp.ge.s32.totalorder %s1582_s15, 4  }
 0x46d   : > { %s1909_s27 = smov %s1443_s28  ;;  %s1910_s28 = smov %s1447_s29 }
 0x46e   : > { %s1912_s30 = smov %s1582_s15  ;;  %25 = sbr.rel (!%p23_p5) target bundleno = 11 (0xb), region = 119 }
 0x472   : > { %s1911_s29 = smov %s1908_s13 }
 0x473   :  { %1042 = vsyncpa [#allocation5], 1 }
 0x474   :  { %1044 = vsyncpa [#allocation5 + $0x1], 1 }
 0x475   :  { %1045 = vsyncpa [#allocation8], 1 }
 0x476   :  { %1046 = vsyncpa [#allocation11], 1 }
 0x477   :  { %1048 = vsyncpa [#allocation11 + $0x1], 1 }
 0x478   :  { %1049 = vsyncpa [#allocation6], 1 }
 0x479   :  { %1051 = vsyncpa [#allocation6 + $0x1], 1 }

</bundles_post_ra>
